<compile_context>
chip_gen: v5e
topology: v5e:2x2
jax: 0.10.0
libtpu: 0.0.40
codegen_flags: <defaults>
</compile_context>

<pallas_src>
import functools

import jax
import jax.numpy as jnp
from jax.experimental import pallas as pl
from jax.experimental.pallas import tpu as pltpu

LANES = 128
SUBLANES = 8
ACC_ROWS_MAX = 32               # 4 independent (8,128) accumulation chains
MAX_BLOCK_BYTES = 4 << 20       # ~4 MiB per input per pipeline buffer
_LN2 = 0.6931471805599453


def _stable_logcosh_f32(x):
    """log(cosh(x)) = |x| + log1p(exp(-2|x|)) - ln2, overflow-free in f32."""
    ax = jnp.abs(x)
    return ax + jnp.log1p(jnp.exp(jnp.float32(-2.0) * ax)) - jnp.float32(_LN2)


def _logcosh_kernel(pred_ref, true_ref, partial_ref, *,
                    n_rows, block_rows, acc_rows, steps_per_split):
    """Accumulate a (acc_rows, 128) partial sum of log(cosh(pred-true+eps))."""
    s = pl.program_id(0)   # parallel split (separate TensorCore on v7x)
    j = pl.program_id(1)   # reduction step within the split

    @pl.when(j == 0)
    def _():
        partial_ref[...] = jnp.zeros_like(partial_ref)

    x = (pred_ref[...].astype(jnp.float32)
         - true_ref[...].astype(jnp.float32)
         + jnp.float32(1e-12))
    val = _stable_logcosh_f32(x)

    # Row-validity mask: covers the partial last block (Pallas pads it with
    # unspecified data) and fully out-of-range (clamped duplicate) steps of
    # the last split.  Must be a select (not a multiply) so garbage NaN/inf
    # rows are dropped cleanly.
    blk = s * steps_per_split + j
    row0 = blk * block_rows
    rows = jax.lax.broadcasted_iota(jnp.int32, (block_rows, 1), 0) + row0
    val = jnp.where(rows < n_rows, val, jnp.float32(0.0))

    # Fold the block into an (acc_rows, 128) slab: acc_rows/8 independent
    # vreg add chains (keeps the serialized VALU latency off the critical
    # path under the large DMA).  Pure sublane regrouping -> free reshape.
    partial_ref[0] += jnp.sum(
        val.reshape(block_rows // acc_rows, acc_rows, LANES), axis=0)


def _is_multicore_chip():
    """True on chips with >1 TensorCore per chip (v7x); False on v5e/v6e."""
    try:
        kind = jax.devices()[0].device_kind.lower()
    except Exception:
        return False
    return "v7" in kind


def log_cosh_loss(pred, true):
    assert pred.shape == true.shape, "pred/true must have identical shapes"
    total = int(pred.size)
    itemsize = jnp.dtype(pred.dtype).itemsize

    flat_p = jnp.ravel(pred)   # keep native dtype (bf16 stays bf16)
    flat_t = jnp.ravel(true)

    # Copy-free split: the kernel handles the bulk that is a whole number of
    # (8,128) tiles (pure reshape, no pad/copy); the <=1023-element tail is
    # folded in plain JAX.
    tile = SUBLANES * LANES
    bulk = (total // tile) * tile
    tail = total - bulk

    if tail:
        pt = flat_p[bulk:].astype(jnp.float32)
        tt = flat_t[bulk:].astype(jnp.float32)
        tail_sum = jnp.sum(_stable_logcosh_f32(pt - tt + jnp.float32(1e-12)))
    else:
        tail_sum = jnp.float32(0.0)

    if bulk == 0:
        # Fewer than 1024 elements: everything already handled in plain JAX.
        return tail_sum / jnp.float32(total)

    n_rows = bulk // LANES                       # multiple of 8
    p2d = flat_p[:bulk].reshape(n_rows, LANES)
    t2d = flat_t[:bulk].reshape(n_rows, LANES)

    # Dtype-aware block size: ~4 MiB per input per pipeline buffer.
    block_rows_cap = max(SUBLANES, (MAX_BLOCK_BYTES // (LANES * itemsize))
                         // SUBLANES * SUBLANES)
    block_rows = min(block_rows_cap, n_rows)     # multiple of 8

    # Accumulator width: largest of {32, 16, 8} rows that divides block_rows.
    acc_rows = SUBLANES
    for cand in (ACC_ROWS_MAX, 16):
        if block_rows % cand == 0:
            acc_rows = cand
            break

    n_blocks = pl.cdiv(n_rows, block_rows)

    # 2-way split across the leading "parallel" axis only where it can help
    # (multi-TensorCore chips); on 1-TC chips it would just serialize and
    # possibly waste a duplicated (masked) step when n_blocks is odd.
    n_split = 2 if (_is_multicore_chip() and n_blocks >= 2) else 1
    steps_per_split = pl.cdiv(n_blocks, n_split)

    def _in_map(s, j):
        # Clamp fully out-of-range steps of the last split to a valid block;
        # the kernel masks their contribution via the nominal block index.
        return (jnp.minimum(s * steps_per_split + j, n_blocks - 1), 0)

    kernel = functools.partial(
        _logcosh_kernel,
        n_rows=n_rows,
        block_rows=block_rows,
        acc_rows=acc_rows,
        steps_per_split=steps_per_split,
    )

    # Scoped-VMEM budget: 2 inputs x 2 pipeline buffers x block bytes plus
    # headroom for the accumulator output and misc scratch.  Capped well
    # under v7x's 64 MiB physical VMEM.
    block_bytes = block_rows * LANES * itemsize
    vmem_limit = min(4 * block_bytes + (16 << 20), 48 << 20)

    partials = pl.pallas_call(
        kernel,
        out_shape=jax.ShapeDtypeStruct((n_split, acc_rows, LANES), jnp.float32),
        grid_spec=pltpu.PrefetchScalarGridSpec(
            num_scalar_prefetch=0,
            grid=(n_split, steps_per_split),
            in_specs=[
                pl.BlockSpec((block_rows, LANES), _in_map),
                pl.BlockSpec((block_rows, LANES), _in_map),
            ],
            out_specs=pl.BlockSpec((1, acc_rows, LANES), lambda s, j: (s, 0, 0)),
        ),
        compiler_params=pltpu.CompilerParams(
            dimension_semantics=("parallel", "arbitrary"),
            vmem_limit_bytes=vmem_limit),
    )(p2d, t2d)

    # One tiny cross-lane reduce + the mean divide, done in plain JAX.
    return (jnp.sum(partials) + tail_sum) / jnp.float32(total)


if __name__ == "__main__":
    key = jax.random.PRNGKey(0)
    k1, k2 = jax.random.split(key)
    # Small NCHW-shaped example inputs (loss is shape-agnostic elementwise).
    pred = jax.random.normal(k1, (2, 4, 16, 16), dtype=jnp.float32)
    true = jax.random.normal(k2, (2, 4, 16, 16), dtype=jnp.float32)

    loss = jax.block_until_ready(log_cosh_loss(pred, true))

    # Pure-JAX reference check (same math as the PyTorch module).
    ref = jnp.mean(jnp.log(jnp.cosh(pred - true + 1e-12)))
    assert jnp.allclose(loss, ref, rtol=1e-5, atol=1e-6), (loss, ref)

    print("KERNEL_OK")
</pallas_src>

<mosaic_0001>
module attributes {stable_mosaic.version = 11 : i64} {
  func.func @_logcosh_kernel(%arg0: i32, %arg1: i32, %arg2: memref<16x128xf32, #tpu.memory_space<vmem>>, %arg3: memref<16x128xf32, #tpu.memory_space<vmem>>, %arg4: memref<1x16x128xf32, #tpu.memory_space<vmem>>) attributes {dimension_semantics = [#tpu.dimension_semantics<parallel>, #tpu.dimension_semantics<arbitrary>], iteration_bounds = array<i64: 1, 1>, scalar_prefetch = 0 : i64, scratch_operands = 0 : i64, tpu.core_type = #tpu.core_type<tc>, window_params = [{transform_indices = @transform_0, window_bounds = array<i64: 16, 128>}, {transform_indices = @transform_1, window_bounds = array<i64: 16, 128>}, {transform_indices = @transform_2, window_bounds = array<i64: 1, 16, 128>}]} {
    %c0_i32 = arith.constant 0 : i32
    %0 = arith.cmpi eq, %arg1, %c0_i32 : i32
    %1 = arith.extui %0 : i1 to i32
    %c0_i32_0 = arith.constant 0 : i32
    %2 = arith.cmpi ne, %1, %c0_i32_0 : i32
    scf.if %2 {
      %cst_15 = arith.constant 0.000000e+00 : f32
      %36 = vector.broadcast %cst_15 : f32 to vector<1x16x128xf32>
      %c0_16 = arith.constant 0 : index
      %c0_17 = arith.constant 0 : index
      %c0_18 = arith.constant 0 : index
      %37 = vector.load %arg4[%c0_16, %c0_17, %c0_18] : memref<1x16x128xf32, #tpu.memory_space<vmem>>, vector<1x16x128xf32>
      tpu.vector_store %arg4[%c0_16, %c0_17, %c0_18], %36 {strides = array<i32>} : memref<1x16x128xf32, #tpu.memory_space<vmem>>, vector<1x16x128xf32>,
    } else {
    }
    %c0 = arith.constant 0 : index
    %c0_1 = arith.constant 0 : index
    %3 = vector.load %arg2[%c0, %c0_1] : memref<16x128xf32, #tpu.memory_space<vmem>>, vector<16x128xf32>
    %c0_2 = arith.constant 0 : index
    %c0_3 = arith.constant 0 : index
    %4 = vector.load %arg3[%c0_2, %c0_3] : memref<16x128xf32, #tpu.memory_space<vmem>>, vector<16x128xf32>
    %5 = arith.subf %3, %4 : vector<16x128xf32>
    %cst = arith.constant 9.99999996E-13 : f32
    %6 = vector.broadcast %cst : f32 to vector<16x128xf32>
    %7 = arith.addf %5, %6 : vector<16x128xf32>
    %8 = math.absf %7 : vector<16x128xf32>
    %cst_4 = arith.constant -2.000000e+00 : f32
    %9 = vector.broadcast %cst_4 : f32 to vector<16x128xf32>
    %10 = arith.mulf %9, %8 : vector<16x128xf32>
    %11 = math.exp %10 : vector<16x128xf32>
    %12 = math.log1p %11 : vector<16x128xf32>
    %13 = arith.addf %8, %12 : vector<16x128xf32>
    %cst_5 = arith.constant 0.693147182 : f32
    %14 = vector.broadcast %cst_5 : f32 to vector<16x128xf32>
    %15 = arith.subf %13, %14 : vector<16x128xf32>
    %c1_i32 = arith.constant 1 : i32
    %16 = arith.muli %arg0, %c1_i32 : i32
    %17 = arith.addi %16, %arg1 : i32
    %c16_i32 = arith.constant 16 : i32
    %18 = arith.muli %17, %c16_i32 : i32
    %19 = tpu.iota {dimensions = array<i32: 0>} : vector<16x1xi32>
    %20 = vector.broadcast %18 : i32 to vector<16x1xi32>
    %21 = arith.addi %19, %20 : vector<16x1xi32>
    %c16_i32_6 = arith.constant 16 : i32
    %22 = vector.broadcast %c16_i32_6 : i32 to vector<16x1xi32>
    %23 = arith.cmpi slt, %21, %22 : vector<16x1xi32>
    %cst_7 = arith.constant 0.000000e+00 : f32
    %24 = vector.shape_cast %23 : vector<16x1xi1> to vector<16x1xi1>
    %25 = vector.broadcast %24 : vector<16x1xi1> to vector<16x128xi1>
    %26 = vector.broadcast %cst_7 : f32 to vector<16x128xf32>
    %27 = arith.select %25, %15, %26 : vector<16x128xi1>, vector<16x128xf32>
    %c0_8 = arith.constant 0 : index
    %c0_9 = arith.constant 0 : index
    %c0_10 = arith.constant 0 : index
    %28 = vector.load %arg4[%c0_8, %c0_9, %c0_10] : memref<1x16x128xf32, #tpu.memory_space<vmem>>, vector<1x16x128xf32>
    %29 = vector.shape_cast %28 : vector<1x16x128xf32> to vector<16x128xf32>
    %30 = vector.shape_cast %27 : vector<16x128xf32> to vector<1x16x128xf32>
    %cst_11 = arith.constant dense<0.000000e+00> : vector<16x128xf32>
    %31 = vector.multi_reduction <add>, %30, %cst_11 [0] : vector<1x16x128xf32> to vector<16x128xf32>
    %32 = arith.addf %29, %31 : vector<16x128xf32>
    %c0_12 = arith.constant 0 : index
    %c0_13 = arith.constant 0 : index
    %c0_14 = arith.constant 0 : index
    %33 = vector.load %arg4[%c0_12, %c0_13, %c0_14] : memref<1x16x128xf32, #tpu.memory_space<vmem>>, vector<1x16x128xf32>
    %34 = vector.shape_cast %33 : vector<1x16x128xf32> to vector<16x128xf32>
    %35 = vector.shape_cast %32 : vector<16x128xf32> to vector<1x16x128xf32>
    tpu.vector_store %arg4[%c0_12, %c0_13, %c0_14], %35 {strides = array<i32>} : memref<1x16x128xf32, #tpu.memory_space<vmem>>, vector<1x16x128xf32>,
    return
  }
  func.func @transform_0(%arg0: i32, %arg1: i32) -> (i32, i32) {
    %c1_i32 = arith.constant 1 : i32
    %0 = arith.muli %arg0, %c1_i32 : i32
    %1 = arith.addi %0, %arg1 : i32
    %c0_i32 = arith.constant 0 : i32
    %2 = arith.minsi %1, %c0_i32 : i32
    %c0_i32_0 = arith.constant 0 : i32
    %c0_i32_1 = arith.constant 0 : i32
    return %2, %c0_i32_0 : i32, i32
  }
  func.func @transform_1(%arg0: i32, %arg1: i32) -> (i32, i32) {
    %c1_i32 = arith.constant 1 : i32
    %0 = arith.muli %arg0, %c1_i32 : i32
    %1 = arith.addi %0, %arg1 : i32
    %c0_i32 = arith.constant 0 : i32
    %2 = arith.minsi %1, %c0_i32 : i32
    %c0_i32_0 = arith.constant 0 : i32
    %c0_i32_1 = arith.constant 0 : i32
    return %2, %c0_i32_0 : i32, i32
  }
  func.func @transform_2(%arg0: i32, %arg1: i32) -> (i32, i32, i32) {
    %c0_i32 = arith.constant 0 : i32
    %c0_i32_0 = arith.constant 0 : i32
    %c0_i32_1 = arith.constant 0 : i32
    return %arg0, %c0_i32, %c0_i32_0 : i32, i32, i32
  }
}

</mosaic_0001>

<bundles_post_ra>
// kernel: tpu_custom_call.1
= control target key start
LH: loop header
LB: loop body
LE: loop exit
PB: predicated region body
PF: predicated region fallthrough
CT: control target
= control target key end

     0   :  { %7 = vsyncpa [#allocation3], 0  ;;  %s288_s0 = inlined_call_operand.hbm [shape: f32[16,128], index: 0, kind: input, shape index: {}]   ;;  %s289_s1 = inlined_call_operand.hbm [shape: f32[16,128], index: 1, kind: input, shape index: {}]   ;;  %s290_s2 = inlined_call_operand.hbm [shape: f32[1,16,128], index: 2, kind: output, shape index: {}]  }
   0x1   :  { %8 = vsyncpa [#allocation6], 0 }
   0x2   :  { %9 = vsyncpa [#allocation4], 0  ;;  %s20_s11 = sshll.u32 %s288_s0, 4  ;;  %s250_s12 = smov [#allocation2]   ;;  %s21_s11 = int_to_ptr.hbm [resolvable:$true] %s20_s11 }
   0x3   :  { %s22_s13 = sshll.u32 %s250_s12, 4  ;;  %s39_s16 = sshll.u32 %s289_s1, 4  ;;  %s23_s13 = int_to_ptr.vmem [resolvable:$true] %s22_s13  ;;  %s40_s16 = int_to_ptr.hbm [resolvable:$true] %s39_s16 }
   0x4   :  { %s251_s17 = smov 128   ;;  %s252_s18 = smov 8  }
   0x5   :  { %28 = dma.hbm_to_vmem [thread:$0]  %s21_s11, 256, %s23_s13, [#allocation3], %s251_s17, %s251_s17, %s252_s18  }
   0x6   :  { %s253_s19 = smov [#allocation5]  }
   0x7   :  { %s41_s20 = sshll.u32 %s253_s19, 4  ;;  %s42_s20 = int_to_ptr.vmem [resolvable:$true] %s41_s20 }
   0x8   :  { %47 = dma.hbm_to_vmem [thread:$0]  %s40_s16, 256, %s42_s20, [#allocation6], %s251_s17, %s251_s17, %s252_s18  }
   0x9   :  { %244 = dma.done.wait [#allocation3], 256  }
   0xa   :  { %245 = vsyncadd [#allocation3], 4294967040 }
   0xb   :  { %246 = dma.done.wait [#allocation6], 256  }
   0xc   :  { %247 = vsyncadd [#allocation6], 4294967040  ;;  %v70_v0 = vld [vmem:[#allocation2] sm:$0xff]  ;;  %v72_v1 = vld [vmem:[#allocation5] sm:$0xff]  ;;  %s254_s0 = smov [#allocation7]   ;;  %s138_s23 = sshll.u32 %s290_s2, 4  ;;  %s139_s23 = int_to_ptr.hbm [resolvable:$true] %s138_s23 }
   0xd   :  { %v71_v2 = vld [vmem:[#allocation2 + $0x8] sm:$0xff]  ;;  %v74_v3 = vsub.f32 %v70_v0, %v72_v1  ;;  %v73_v4 = vld [vmem:[#allocation5 + $0x8] sm:$0xff]  ;;  %s136_s1 = sshll.u32 %s254_s0, 4  ;;  %s137_s1 = int_to_ptr.vmem [resolvable:$true] %s136_s1 }
   0xe   :  { %v75_v5 = vsub.f32 %v71_v2, %v73_v4 }
   0xf   :  { %v76_v6 = vadd.f32 1e-12, %v74_v3 }
  0x10   :  { %v77_v7 = vadd.f32 1e-12, %v75_v5 }
  0x11   :  { %v78_v8 = vand.u32 2147483647, %v76_v6 }
  0x12   :  { %v79_v9 = vand.u32 2147483647, %v77_v7 }
  0x13   :  { %v80_v10 = vmul.f32 -2.0, %v78_v8 }
  0x14   :  { %v81_v11 = vmul.f32 -2.0, %v79_v9 }
  0x15   :  { %v82_v12 = vmul.f32 1.442695, %v80_v10 }
  0x16   :  { %v84_v13 = vmul.f32 1.442695, %v81_v11 }
  0x17   :  { %164 = vpow2.f32 %v82_v12 }
  0x18   :  { %166 = vpow2.f32 %v84_v13 }
  0x1d   :  { %v165_v14 = vpop.eup %164 }
  0x1e   :  { %v167_v15 = vpop.eup %166  ;;  %v86_v16 = vadd.f32 1.0, %v165_v14  ;;  %v89_v17 = vmul.f32 -0.5, %v165_v14  ;;  %v92_v21 = vand.u32 2147483647, %v165_v14 }
  0x1f   :  { %v95_v18 = vadd.f32 1.0, %v167_v15  ;;  %v98_v19 = vmul.f32 -0.5, %v167_v15  ;;  %v101_v23 = vand.u32 2147483647, %v167_v15 }
  0x20   :  { %168 = vlog2.f32 %v86_v16  ;;  %v90_v20 = vadd.f32 1.0, %v89_v17  ;;  %vm93_vm0 = vcmp.lt.f32.partialorder %v92_v21, 0.0004427343 }
  0x21   :  { %170 = vlog2.f32 %v95_v18  ;;  %v99_v22 = vadd.f32 1.0, %v98_v19  ;;  %vm102_vm1 = vcmp.lt.f32.partialorder %v101_v23, 0.0004427343 }
  0x22   :  { %v91_v24 = vmul.f32 %v165_v14, %v90_v20 }
  0x23   :  { %v100_v26 = vmul.f32 %v167_v15, %v99_v22 }
  0x26   :  { %v169_v25 = vpop.eup %168 }
  0x27   :  { %v171_v27 = vpop.eup %170  ;;  %v88_v28 = vmul.f32 0.6931472, %v169_v25 }
  0x28   :  { %v97_v29 = vmul.f32 0.6931472, %v171_v27 }
  0x29   :  { %v94_v30 = vsel %vm93_vm0, %v91_v24, %v88_v28 }
  0x2a   :  { %v104_v31 = vadd.f32 %v94_v30, %v78_v8  ;;  %v103_v32 = vsel %vm102_vm1, %v100_v26, %v97_v29 }
  0x2b   :  { %v105_v33 = vadd.f32 %v103_v32, %v79_v9 }
  0x2c   :  { %v156_v34 = vadd.f32 -0.6931472, %v104_v31 }
  0x2d   :  { %v157_v35 = vadd.f32 -0.6931472, %v105_v33 }
  0x2e   :  { %130 = vst [vmem:[#allocation7] sm:$0xff] %v156_v34 }
  0x2f   :  { %131 = vst [vmem:[#allocation7 + $0x8] sm:$0xff] %v157_v35 }
  0x30   :  { %144 = dma.vmem_to_hbm [thread:$0]  %s137_s1, 256, %s139_s23, [#allocation4], %s251_s17, %s251_s17, %s252_s18  }
  0x31   :  { %248 = dma.done.wait [#allocation4], 256  }
  0x32   :  { %249 = vsyncadd [#allocation4], 4294967040 }
  0x33   :  { %149 = vsyncpa [#allocation3], 1 }
  0x34   :  { %150 = vsyncpa [#allocation6], 1 }
  0x35   :  { %151 = vsyncpa [#allocation4], 1 }

</bundles_post_ra>
